<compile_context>
chip_gen: v5e
topology: v5e:2x2
jax: 0.10.0
libtpu: 0.0.40
codegen_flags: <defaults>
</compile_context>

<pallas_src>
import functools

import jax
import jax.numpy as jnp
from jax.experimental import pallas as pl
from jax.experimental.pallas import tpu as pltpu

_EPS = 1e-5


# ----------------------------- kernels --------------------------------------

def _fused_kernel(x_ref, g_ref, b_ref, o_ref, *, inv_count, eps):
    """Single-call fast path: whole tensor VMEM-resident (stats + normalize)."""
    x = x_ref[...].astype(jnp.float32)                            # (N, C, HW)
    s = jnp.sum(jnp.sum(x, axis=2, keepdims=True), axis=0, keepdims=True)
    q = jnp.sum(jnp.sum(x * x, axis=2, keepdims=True), axis=0, keepdims=True)
    mean = s * inv_count                                          # (1, C, 1)
    var = jnp.maximum(q * inv_count - mean * mean, 0.0)           # biased var
    a = g_ref[...] * jax.lax.rsqrt(var + eps)
    b = b_ref[...] - mean * a
    o_ref[...] = (x * a + b).astype(o_ref.dtype)


def _reduce_full_hw_kernel(x_ref, sum_ref, sq_ref):
    """Mode A phase 1: contiguous (TN, C, HW) slab -> one (1, C, 1) partial."""
    x = x_ref[...].astype(jnp.float32)                            # (TN, C, HW)
    s = jnp.sum(x, axis=2, keepdims=True)                         # lane reduce
    q = jnp.sum(x * x, axis=2, keepdims=True)
    sum_ref[...] = jnp.sum(s, axis=0, keepdims=True)              # (1, C, 1)
    sq_ref[...] = jnp.sum(q, axis=0, keepdims=True)


def _reduce_split_hw_kernel(x_ref, sum_ref, sq_ref, *, hw, thw, need_mask):
    """Mode B phase 1: per-sample partials accumulated across HW lane tiles."""
    @pl.when(pl.program_id(1) == 0)
    def _():
        sum_ref[...] = jnp.zeros_like(sum_ref)
        sq_ref[...] = jnp.zeros_like(sq_ref)

    x = x_ref[...].astype(jnp.float32)                            # (1, C, thw)
    if need_mask:  # last tile may read past HW -> zero out the padding lanes
        pos = (jax.lax.broadcasted_iota(jnp.int32, x.shape, 2)
               + pl.program_id(1) * thw)
        x = jnp.where(pos < hw, x, 0.0)
    sum_ref[...] += jnp.sum(x, axis=2, keepdims=True)
    sq_ref[...] += jnp.sum(x * x, axis=2, keepdims=True)


def _normalize_kernel(x_ref, sum_ref, sq_ref, g_ref, b_ref, o_ref,
                      *, inv_count, eps):
    """Phase 2: recompute the folded affine from partials, then y = x*a + b."""
    s = jnp.sum(sum_ref[...], axis=0, keepdims=True)              # (1, C, 1)
    q = jnp.sum(sq_ref[...], axis=0, keepdims=True)
    mean = s * inv_count
    var = jnp.maximum(q * inv_count - mean * mean, 0.0)
    a = g_ref[...] * jax.lax.rsqrt(var + eps)                     # EUP + VPU filler
    b = b_ref[...] - mean * a
    x = x_ref[...].astype(jnp.float32)                            # (TN,C,HW)|(1,C,thw)
    o_ref[...] = (x * a + b).astype(o_ref.dtype)


# ----------------------------- tiling ---------------------------------------

def _hw_budgets():
    """(vmem_limit_bytes, per-buffer tile budget, fast-path cap), per chip gen."""
    try:
        vmem_phys = pltpu.get_tpu_info().vmem_capacity_bytes
    except Exception:
        vmem_phys = 64 << 20                      # assume v7x-like (most restrictive)
    if vmem_phys >= (128 << 20):                  # v5e / v6e: 128 MiB VMEM
        return 64 << 20, 8 << 20, 40 << 20
    return 32 << 20, 5 << 20, 20 << 20            # v7x: 64 MiB per TensorCore


def _choose_tiling(N, C, HW, itemsize, budget_bytes):
    """Return ('N', tn, HW) contiguous slabs, or ('HW', 1, thw) lane tiles."""
    per_sample_f32 = C * HW * 4                   # f32 working copy dominates VMEM
    if per_sample_f32 <= budget_bytes:
        tn = max(1, min(N, budget_bytes // per_sample_f32))
        while N % tn:                             # keep the grid exact
            tn -= 1
        return "N", tn, HW
    # HW must be split: >= 2 KiB contiguous bytes per row, multiple of 128.
    min_thw = max(128, ((2048 // itemsize) // 128) * 128)
    max_thw = max(128, (budget_bytes // (C * 4)) // 128 * 128)
    min_thw = min(min_thw, max_thw)
    thw = None
    if HW % 128 == 0:                             # prefer an exact divisor of HW
        t = max_thw
        while t >= min_thw:
            if HW % t == 0:
                thw = t
                break
            t -= 128
    if thw is None:                               # cdiv grid + masked last tile
        thw = max_thw
    return "HW", 1, thw


# ----------------------------- wrapper --------------------------------------

def batch_norm_2d(x, gamma, beta, eps=_EPS, *, force_two_phase=False,
                  tile_budget_bytes=None):
    """BatchNorm2d forward with batch statistics. x: (N, C, H, W) NCHW."""
    N, C, H, W = x.shape
    HW = H * W
    x3 = x.reshape(N, C, HW)                      # free view, no HBM transpose
    inv_count = 1.0 / float(N * HW)
    g3 = gamma.astype(jnp.float32).reshape(1, C, 1)
    b3 = beta.astype(jnp.float32).reshape(1, C, 1)
    itemsize = x.dtype.itemsize

    vmem_limit, budget, fast_cap = _hw_budgets()
    if tile_budget_bytes is not None:
        budget = tile_budget_bytes

    # ---- Fast path: whole tensor resident in VMEM, one launch, 2x traffic. ----
    fast_bytes = N * C * HW * (4 * itemsize + 8)  # dbl-buffered in/out + f32 temps
    if not force_two_phase and fast_bytes <= fast_cap:
        out3 = pl.pallas_call(
            functools.partial(_fused_kernel, inv_count=inv_count, eps=eps),
            out_shape=jax.ShapeDtypeStruct((N, C, HW), x.dtype),
            grid=(1,),
            in_specs=[pl.BlockSpec((N, C, HW), lambda i: (0, 0, 0)),
                      pl.BlockSpec((1, C, 1), lambda i: (0, 0, 0)),
                      pl.BlockSpec((1, C, 1), lambda i: (0, 0, 0))],
            out_specs=pl.BlockSpec((N, C, HW), lambda i: (0, 0, 0)),
            compiler_params=pltpu.CompilerParams(
                dimension_semantics=("arbitrary",),
                vmem_limit_bytes=vmem_limit),
        )(x3, g3, b3)
        return out3.reshape(N, C, H, W)

    mode, tn, thw = _choose_tiling(N, C, HW, itemsize, budget)

    if mode == "N":
        # Mode A: contiguous (tn, C, HW) slabs, no HW split, fully parallel.
        gn = N // tn
        grid = (gn,)
        x_spec = pl.BlockSpec((tn, C, HW), lambda n: (n, 0, 0))
        o_spec = pl.BlockSpec((tn, C, HW), lambda n: (n, 0, 0))
        part_out_specs = (pl.BlockSpec((1, C, 1), lambda n: (n, 0, 0)),
                          pl.BlockSpec((1, C, 1), lambda n: (n, 0, 0)))
        reduce_kernel = _reduce_full_hw_kernel
        reduce_dims = ("parallel",)
        norm_dims = ("parallel",)
        full_idx = lambda n: (0, 0, 0)
        n_parts = gn
    else:
        # Mode B: split HW into lane tiles; per-batch partials keep the N axis
        # "parallel" (megacore-friendly on v7x), only the HW axis revisits.
        gt = pl.cdiv(HW, thw)
        need_mask = (gt * thw != HW)
        grid = (N, gt)
        x_spec = pl.BlockSpec((1, C, thw), lambda n, t: (n, 0, t))
        o_spec = pl.BlockSpec((1, C, thw), lambda n, t: (n, 0, t))
        part_out_specs = (pl.BlockSpec((1, C, 1), lambda n, t: (n, 0, 0)),
                          pl.BlockSpec((1, C, 1), lambda n, t: (n, 0, 0)))
        reduce_kernel = functools.partial(_reduce_split_hw_kernel,
                                          hw=HW, thw=thw, need_mask=need_mask)
        reduce_dims = ("parallel", "arbitrary")
        norm_dims = ("parallel", "parallel")
        full_idx = lambda n, t: (0, 0, 0)
        n_parts = N

    # ---- Phase 1: per-channel partial sum / sum-of-squares (f32). ----
    sum_p, sq_p = pl.pallas_call(
        reduce_kernel,
        out_shape=(jax.ShapeDtypeStruct((n_parts, C, 1), jnp.float32),
                   jax.ShapeDtypeStruct((n_parts, C, 1), jnp.float32)),
        grid=grid,
        in_specs=[x_spec],
        out_specs=part_out_specs,
        compiler_params=pltpu.CompilerParams(
            dimension_semantics=reduce_dims, vmem_limit_bytes=vmem_limit),
    )(x3)

    # ---- Phase 2: glue math folded into the kernel, y = x*a + b. ----
    part_spec = pl.BlockSpec((n_parts, C, 1), full_idx)
    cb_spec = pl.BlockSpec((1, C, 1), full_idx)
    out3 = pl.pallas_call(
        functools.partial(_normalize_kernel, inv_count=inv_count, eps=eps),
        out_shape=jax.ShapeDtypeStruct((N, C, HW), x.dtype),
        grid=grid,
        in_specs=[x_spec, part_spec, part_spec, cb_spec, cb_spec],
        out_specs=o_spec,
        compiler_params=pltpu.CompilerParams(
            dimension_semantics=norm_dims, vmem_limit_bytes=vmem_limit),
    )(x3, sum_p, sq_p, g3, b3)

    return out3.reshape(N, C, H, W)


# ----------------------------- self-test ------------------------------------

if __name__ == "__main__":
    key = jax.random.PRNGKey(0)

    def ref_bn(x, gamma, beta, eps=_EPS):
        mean = x.mean(axis=(0, 2, 3), keepdims=True)
        var = ((x - mean) ** 2).mean(axis=(0, 2, 3), keepdims=True)
        return ((x - mean) / jnp.sqrt(var + eps)
                * gamma.reshape(1, -1, 1, 1) + beta.reshape(1, -1, 1, 1))

    def run_case(shape, **kw):
        n, c, h, w = shape
        kx, kg, kb = jax.random.split(jax.random.fold_in(key, n * c * h * w), 3)
        x = jax.random.normal(kx, shape, dtype=jnp.float32) * 2.0 + 0.5
        gamma = (jnp.ones((c,), jnp.float32)
                 + 0.1 * jax.random.normal(kg, (c,), jnp.float32))
        beta = 0.1 * jax.random.normal(kb, (c,), jnp.float32)
        y = jax.block_until_ready(batch_norm_2d(x, gamma, beta, **kw))
        err = float(jnp.max(jnp.abs(y - ref_bn(x, gamma, beta))))
        assert y.shape == shape and err < 1e-4, (shape, kw, err)

    # 1) canonical small shape -> single-call VMEM-resident fast path
    run_case((2, 4, 16, 16))
    # 2) same shape, two-phase mode A (contiguous full-HW slabs over N)
    run_case((2, 4, 16, 16), force_two_phase=True)
    # 3) two-phase mode B: HW split into 128-lane tiles that divide HW
    run_case((2, 8, 16, 16), force_two_phase=True, tile_budget_bytes=4096)
    # 4) two-phase mode B: non-divisible HW -> cdiv grid + masked last tile
    run_case((2, 8, 15, 15), force_two_phase=True, tile_budget_bytes=4096)

    print("KERNEL_OK")
</pallas_src>

<mosaic_0001>
module attributes {stable_mosaic.version = 11 : i64} {
  func.func @_fused_kernel(%arg0: i32, %arg1: memref<2x4x256xf32, #tpu.memory_space<vmem>>, %arg2: memref<1x4x1xf32, #tpu.memory_space<vmem>>, %arg3: memref<1x4x1xf32, #tpu.memory_space<vmem>>, %arg4: memref<2x4x256xf32, #tpu.memory_space<vmem>>) attributes {dimension_semantics = [#tpu.dimension_semantics<arbitrary>], iteration_bounds = array<i64: 1>, scalar_prefetch = 0 : i64, scratch_operands = 0 : i64, tpu.core_type = #tpu.core_type<tc>, window_params = [{pipeline_mode = #tpu.pipeline_mode<synchronous>, transform_indices = @transform_0, window_bounds = array<i64: 2, 4, 256>}, {pipeline_mode = #tpu.pipeline_mode<synchronous>, transform_indices = @transform_1, window_bounds = array<i64: 1, 4, 1>}, {pipeline_mode = #tpu.pipeline_mode<synchronous>, transform_indices = @transform_2, window_bounds = array<i64: 1, 4, 1>}, {pipeline_mode = #tpu.pipeline_mode<synchronous>, transform_indices = @transform_3, window_bounds = array<i64: 2, 4, 256>}]} {
    %c0 = arith.constant 0 : index
    %c0_0 = arith.constant 0 : index
    %c0_1 = arith.constant 0 : index
    %0 = vector.load %arg1[%c0, %c0_0, %c0_1] : memref<2x4x256xf32, #tpu.memory_space<vmem>>, vector<2x4x256xf32>
    %cst = arith.constant dense<0.000000e+00> : vector<2x4xf32>
    %1 = vector.multi_reduction <add>, %0, %cst [2] : vector<2x4x256xf32> to vector<2x4xf32>
    %2 = vector.shape_cast %1 : vector<2x4xf32> to vector<2x4x1xf32>
    %cst_2 = arith.constant dense<0.000000e+00> : vector<4x1xf32>
    %3 = vector.multi_reduction <add>, %2, %cst_2 [0] : vector<2x4x1xf32> to vector<4x1xf32>
    %4 = vector.shape_cast %3 : vector<4x1xf32> to vector<1x4x1xf32>
    %5 = arith.mulf %0, %0 : vector<2x4x256xf32>
    %cst_3 = arith.constant dense<0.000000e+00> : vector<2x4xf32>
    %6 = vector.multi_reduction <add>, %5, %cst_3 [2] : vector<2x4x256xf32> to vector<2x4xf32>
    %7 = vector.shape_cast %6 : vector<2x4xf32> to vector<2x4x1xf32>
    %cst_4 = arith.constant dense<0.000000e+00> : vector<4x1xf32>
    %8 = vector.multi_reduction <add>, %7, %cst_4 [0] : vector<2x4x1xf32> to vector<4x1xf32>
    %9 = vector.shape_cast %8 : vector<4x1xf32> to vector<1x4x1xf32>
    %cst_5 = arith.constant 0.001953125 : f32
    %10 = vector.broadcast %cst_5 : f32 to vector<1x4x1xf32>
    %11 = arith.mulf %4, %10 : vector<1x4x1xf32>
    %cst_6 = arith.constant 0.001953125 : f32
    %12 = vector.broadcast %cst_6 : f32 to vector<1x4x1xf32>
    %13 = arith.mulf %9, %12 : vector<1x4x1xf32>
    %14 = arith.mulf %11, %11 : vector<1x4x1xf32>
    %15 = arith.subf %13, %14 : vector<1x4x1xf32>
    %cst_7 = arith.constant 0.000000e+00 : f32
    %16 = vector.broadcast %cst_7 : f32 to vector<1x4x1xf32>
    %17 = arith.maximumf %15, %16 : vector<1x4x1xf32>
    %c0_8 = arith.constant 0 : index
    %c0_9 = arith.constant 0 : index
    %c0_10 = arith.constant 0 : index
    %18 = vector.load %arg2[%c0_8, %c0_9, %c0_10] : memref<1x4x1xf32, #tpu.memory_space<vmem>>, vector<1x4x1xf32>
    %cst_11 = arith.constant 9.99999974E-6 : f32
    %19 = vector.broadcast %cst_11 : f32 to vector<1x4x1xf32>
    %20 = arith.addf %17, %19 : vector<1x4x1xf32>
    %21 = math.rsqrt %20 : vector<1x4x1xf32>
    %22 = arith.mulf %18, %21 : vector<1x4x1xf32>
    %c0_12 = arith.constant 0 : index
    %c0_13 = arith.constant 0 : index
    %c0_14 = arith.constant 0 : index
    %23 = vector.load %arg3[%c0_12, %c0_13, %c0_14] : memref<1x4x1xf32, #tpu.memory_space<vmem>>, vector<1x4x1xf32>
    %24 = arith.mulf %11, %22 : vector<1x4x1xf32>
    %25 = arith.subf %23, %24 : vector<1x4x1xf32>
    %26 = vector.broadcast %22 : vector<1x4x1xf32> to vector<2x4x256xf32>
    %27 = arith.mulf %0, %26 : vector<2x4x256xf32>
    %28 = vector.broadcast %25 : vector<1x4x1xf32> to vector<2x4x256xf32>
    %29 = arith.addf %27, %28 : vector<2x4x256xf32>
    %c0_15 = arith.constant 0 : index
    %c0_16 = arith.constant 0 : index
    %c0_17 = arith.constant 0 : index
    %30 = vector.load %arg4[%c0_15, %c0_16, %c0_17] : memref<2x4x256xf32, #tpu.memory_space<vmem>>, vector<2x4x256xf32>
    tpu.vector_store %arg4[%c0_15, %c0_16, %c0_17], %29 {strides = array<i32>} : memref<2x4x256xf32, #tpu.memory_space<vmem>>, vector<2x4x256xf32>,
    return
  }
  func.func @transform_0(%arg0: i32) -> (i32, i32, i32) {
    %c0_i32 = arith.constant 0 : i32
    %c0_i32_0 = arith.constant 0 : i32
    %c0_i32_1 = arith.constant 0 : i32
    %c0_i32_2 = arith.constant 0 : i32
    return %c0_i32, %c0_i32_0, %c0_i32_1 : i32, i32, i32
  }
  func.func @transform_1(%arg0: i32) -> (i32, i32, i32) {
    %c0_i32 = arith.constant 0 : i32
    %c0_i32_0 = arith.constant 0 : i32
    %c0_i32_1 = arith.constant 0 : i32
    %c0_i32_2 = arith.constant 0 : i32
    return %c0_i32, %c0_i32_0, %c0_i32_1 : i32, i32, i32
  }
  func.func @transform_2(%arg0: i32) -> (i32, i32, i32) {
    %c0_i32 = arith.constant 0 : i32
    %c0_i32_0 = arith.constant 0 : i32
    %c0_i32_1 = arith.constant 0 : i32
    %c0_i32_2 = arith.constant 0 : i32
    return %c0_i32, %c0_i32_0, %c0_i32_1 : i32, i32, i32
  }
  func.func @transform_3(%arg0: i32) -> (i32, i32, i32) {
    %c0_i32 = arith.constant 0 : i32
    %c0_i32_0 = arith.constant 0 : i32
    %c0_i32_1 = arith.constant 0 : i32
    %c0_i32_2 = arith.constant 0 : i32
    return %c0_i32, %c0_i32_0, %c0_i32_1 : i32, i32, i32
  }
}

</mosaic_0001>

<bundles_post_ra>
// kernel: tpu_custom_call.1
= control target key start
LH: loop header
LB: loop body
LE: loop exit
PB: predicated region body
PF: predicated region fallthrough
CT: control target
= control target key end

     0   :  { %8 = vsyncpa [#allocation3], 0  ;;  %s282_s0 = inlined_call_operand.hbm [shape: f32[2,4,256], index: 0, kind: input, shape index: {}]   ;;  %s283_s1 = inlined_call_operand.vmem [shape: f32[1,4,1], index: 1, kind: input, shape index: {}]   ;;  %s284_s2 = inlined_call_operand.vmem [shape: f32[1,4,1], index: 2, kind: input, shape index: {}]   ;;  %s285_s3 = inlined_call_operand.hbm [shape: f32[2,4,256], index: 3, kind: output, shape index: {}]  }
   0x1   :  { %9 = vsyncpa [#allocation4], 0  ;;  %s14_s14 = sshll.u32 %s282_s0, 4  ;;  %s214_s15 = smov [#allocation2]   ;;  %s15_s14 = int_to_ptr.hbm [resolvable:$true] %s14_s14 }
   0x2   :  { %s16_s16 = sshll.u32 %s214_s15, 4  ;;  %s215_s17 = smov 128   ;;  %s17_s16 = int_to_ptr.vmem [resolvable:$true] %s16_s16 }
   0x3   :  { %s216_s18 = smov 8  }
   0x4   :  { %22 = dma.hbm_to_vmem [thread:$0]  %s15_s14, 256, %s17_s16, [#allocation3], %s215_s17, %s215_s17, %s216_s18  }
   0x5   :  { %210 = dma.done.wait [#allocation3], 256  }
   0x6   :  { %211 = vsyncadd [#allocation3], 4294967040  ;;  %v246_v0 = vld [vmem:[#allocation2] sm:$0xff]  ;;  %v248_v1 = vld [vmem:[#allocation2 + $0x8] sm:$0xff]  ;;  %vm46_vm0 = vcmask 1043456   ;;  %v217_v25 = vmov 0  }
   0x7   :  { %35 = vst [vmem:[#allocation1] ss:$2 sm:$0xff] %v246_v0  ;;  %v60_v2 = vmul.f32 %v246_v0, %v246_v0  ;;  %v61_v3 = vmul.f32 %v248_v1, %v248_v1  ;;  %158 = vset.pattern.permute.xlu2 %v217_v25  ;;  %159 = vset.pattern.permute.xlu0 %v217_v25  ;;  %v93_v46 = vld [vmem:[%s283_s1] sm:$0xf]  ;;  %v218_v53 = vmov 839922192  }
   0x8   :  { %39 = vst [vmem:[#allocation1 + $0x10] ss:$2 sm:$0xff] %v248_v1  ;;  %v106_v51 = vld [vmem:[%s284_s2] sm:$0xf]  ;;  %v114_v54 = vunpack.c.l.s4 %v218_v53  ;;  %s219_s1 = smov [#allocation5]   ;;  %s139_s25 = sshll.u32 %s285_s3, 4  ;;  %s140_s25 = int_to_ptr.hbm [resolvable:$true] %s139_s25 }
   0x9   :  { %s137_s22 = sshll.u32 %s219_s1, 4  ;;  %s138_s22 = int_to_ptr.vmem [resolvable:$true] %s137_s22 }
   0xa   :  { %v115_v56 = vunpack.c.0.s8 %v114_v54 }
   0xe   :  { %v36_v4 = vld.sshfl [vmem:[#allocation1] sm:$0xff pattern:$0x75316420]  ;;  %v37_v5 = vld.sshfl [vmem:[#allocation1 + $0x8] sm:$0xff pattern:$0x75316420] }
   0xf   :  { %v47_v6 = vsel %vm46_vm0, %v36_v4, 0.0  ;;  %v48_v7 = vsel %vm46_vm0, %v37_v5, 0.0  ;;  %64 = vst [vmem:[#allocation1] ss:$2 sm:$0xff] %v60_v2 }
  0x10   :  { %v49_v8 = vadd.f32 %v48_v7, %v47_v6  ;;  %v40_v9 = vld.sshfl [vmem:[#allocation1 + $0x10] sm:$0xff pattern:$0x75316420]  ;;  %v41_v10 = vld.sshfl [vmem:[#allocation1 + $0x18] sm:$0xff pattern:$0x75316420] }
  0x11   :  { %68 = vst [vmem:[#allocation1 + $0x10] ss:$2 sm:$0xff] %v61_v3  ;;  %v52_v11 = vsel %vm46_vm0, %v40_v9, 0.0  ;;  %v53_v12 = vsel %vm46_vm0, %v41_v10, 0.0 }
  0x12   :  { %50 = vadd.xlane.f32.xlu0 %v49_v8  ;;  %v54_v15 = vadd.f32 %v53_v12, %v52_v11 }
  0x16   :  { %v65_v13 = vld.sshfl [vmem:[#allocation1] sm:$0xff pattern:$0x75316420]  ;;  %v66_v14 = vld.sshfl [vmem:[#allocation1 + $0x8] sm:$0xff pattern:$0x75316420] }
  0x17   :  { %v75_v16 = vsel %vm46_vm0, %v65_v13, 0.0  ;;  %v76_v17 = vsel %vm46_vm0, %v66_v14, 0.0 }
  0x18   :  { %v77_v18 = vadd.f32 %v76_v17, %v75_v16  ;;  %v69_v19 = vld.sshfl [vmem:[#allocation1 + $0x10] sm:$0xff pattern:$0x75316420]  ;;  %v70_v20 = vld.sshfl [vmem:[#allocation1 + $0x18] sm:$0xff pattern:$0x75316420] }
  0x19   :  { %v80_v21 = vsel %vm46_vm0, %v69_v19, 0.0  ;;  %v81_v22 = vsel %vm46_vm0, %v70_v20, 0.0 }
  0x1a   :  { %78 = vadd.xlane.f32.xlu1 %v77_v18  ;;  %55 = vadd.xlane.f32.xlu0 %v54_v15  ;;  %v82_v23 = vadd.f32 %v81_v22, %v80_v21 }
  0x22   :  { %83 = vadd.xlane.f32.xlu1 %v82_v23 }
  0x85   :  { %v51_v24 = vpop.xlane.xlu0 %50 }
  0x86   :  { %v57_v29 = vsel %vm46_vm0, %v51_v24, 0.0 }
  0x8d   :  { %v79_v26 = vpop.xlane.xlu1 %78  ;;  %v56_v27 = vpop.xlane.xlu0 %55 }
  0x8e   :  { %v58_v28 = vsel %vm46_vm0, %v56_v27, 0.0  ;;  %v85_v33 = vsel %vm46_vm0, %v79_v26, 0.0 }
  0x8f   :  { %v59_v30 = vadd.f32 %v58_v28, %v57_v29 }
  0x91   :  { %v88_v31 = vmul.f32 0.001953125, %v59_v30 }
  0x93   :  { %v90_v36 = vmul.f32 %v88_v31, %v88_v31 }
  0x95   :  { %v84_v32 = vpop.xlane.xlu1 %83 }
  0x96   :  { %v86_v34 = vsel %vm46_vm0, %v84_v32, 0.0 }
  0x97   :  { %v87_v35 = vadd.f32 %v86_v34, %v85_v33 }
  0x99   :  { %v89_v37 = vmul.f32 0.001953125, %v87_v35 }
  0x9b   :  { %v91_v38 = vsub.f32 %v89_v37, %v90_v36 }
  0x9d   :  { %v92_v39 = vmax.f32 %v91_v38, 0.0 }
  0x9f   :  { %v94_v40 = vadd.f32 1e-05, %v92_v39 }
  0xa1   :  { %160 = vrsqrt.f32 %v94_v40  ;;  %vm101_vm2 = vweird.f32 %v94_v40 }
  0xa7   :  { %v161_v41 = vpop.eup %160 }
  0xa8   :  { %v96_v42 = vmul.f32 %v161_v41, %v94_v40  ;;  %vm102_vm1 = vweird.f32 %v161_v41 }
  0xa9   :  { %vm103_vm3 = vmor %vm101_vm2, %vm102_vm1 }
  0xaa   :  { %v97_v43 = vmul.f32 %v161_v41, %v96_v42 }
  0xac   :  { %v98_v44 = vmul.f32 0.5, %v97_v43 }
  0xae   :  { %v99_v45 = vsub.f32 1.5, %v98_v44 }
  0xb0   :  { %v100_v47 = vmul.f32 %v161_v41, %v99_v45 }
  0xb2   :  { %v104_v48 = vsel %vm103_vm3, %v161_v41, %v100_v47 }
  0xb3   :  { %v105_v49 = vmul.f32 %v104_v48, %v93_v46 }
  0xb5   :  { %111 = vperm.xlu2 %158, %v105_v49   ;;  %v107_v50 = vmul.f32 %v105_v49, %v88_v31 }
  0xb7   :  { %v108_v52 = vsub.f32 %v106_v51, %v107_v50 }
  0xbd   :  { %122 = vperm.xlu2 %158, %v108_v52  }
 0x10f   :  { %v112_v55 = vpop.permute.xlu2 %111 }
 0x110   :  { %v116_v57 = vperm.slane %v112_v55, %v115_v56 }
 0x112   :  { %v118_v59 = vmul.f32 %v116_v57, %v246_v0  ;;  %v119_v60 = vmul.f32 %v116_v57, %v248_v1 }
 0x117   :  { %v123_v58 = vpop.permute.xlu2 %122 }
 0x118   :  { %v127_v61 = vperm.slane %v123_v58, %v115_v56 }
 0x11a   :  { %v129_v62 = vadd.f32 %v127_v61, %v118_v59  ;;  %v130_v63 = vadd.f32 %v127_v61, %v119_v60 }
 0x11c   :  { %131 = vst [vmem:[#allocation5] sm:$0xff] %v129_v62 }
 0x11d   :  { %132 = vst [vmem:[#allocation5 + $0x8] sm:$0xff] %v130_v63 }
 0x11e   :  { %145 = dma.vmem_to_hbm [thread:$0]  %s138_s22, 256, %s140_s25, [#allocation4], %s215_s17, %s215_s17, %s216_s18  }
 0x11f   :  { %212 = dma.done.wait [#allocation4], 256  }
 0x120   :  { %213 = vsyncadd [#allocation4], 4294967040 }
 0x121   :  { %150 = vsyncpa [#allocation3], 1 }
 0x122   :  { %151 = vsyncpa [#allocation4], 1 }

</bundles_post_ra>
